<compile_context>
chip_gen: v5e
topology: v5e:2x2
jax: 0.10.0
libtpu: 0.0.40
codegen_flags: <defaults>
</compile_context>

<pallas_src>
import jax
import jax.numpy as jnp
from jax.experimental import pallas as pl
from jax.experimental.pallas import tpu as pltpu

INPUT_SIZE = 28 * 28          # 784
HIDDEN_SIZE = 128
OUT_SIZE = 10
OUT_PAD = 128                 # lane-dense output / full-width final matmul
NEG_INF = -1e30               # mask value for padded logit columns
TB_MAX = 1024                 # max batch rows per grid step


def _round_up(x, m):
    return ((x + m - 1) // m) * m


def _choose_tb(B):
    """Batch tile size: multiple of 16 (bf16 sublane packing), capped at
    TB_MAX, and for medium batches small enough that the grid has >=2 steps
    so v7x's two TensorCores both get work."""
    if B <= 32:
        return _round_up(max(B, 1), 16)
    return min(TB_MAX, _round_up(pl.cdiv(B, 2), 16))


def mlp_kernel(x_ref, w1_ref, b1_ref, w2_ref, b2_ref, w3_ref, b3_ref, o_ref):
    # Cast X to bf16 in-kernel (no-op if already bf16); MXU matmuls in bf16,
    # accumulate / bias / ReLU / softmax in f32.
    x = x_ref[...].astype(jnp.bfloat16)

    # Linear(784->128) + ReLU
    h1 = jnp.dot(x, w1_ref[...], preferred_element_type=jnp.float32)
    h1 = jnp.maximum(h1 + b1_ref[...], 0.0)

    # Linear(128->128) + ReLU
    h2 = jnp.dot(h1.astype(jnp.bfloat16), w2_ref[...],
                 preferred_element_type=jnp.float32)
    h2 = jnp.maximum(h2 + b2_ref[...], 0.0)

    # Linear(128->10), padded to 128 output columns (padded cols get -1e30 bias)
    logits = jnp.dot(h2.astype(jnp.bfloat16), w3_ref[...],
                     preferred_element_type=jnp.float32)
    logits = logits + b3_ref[...]

    # Softmax over the class dimension (padded columns -> exp(-inf-ish) == 0)
    m = jnp.max(logits, axis=-1, keepdims=True)
    e = jnp.exp(logits - m)
    denom = jnp.sum(e, axis=-1, keepdims=True)
    o_ref[...] = (e * pl.reciprocal(denom, approx=False)).astype(o_ref.dtype)


def _prepare_params(params):
    """Cast torch-layout (transposed) params; pad only the last layer's N."""
    w1_t, b1, w2_t, b2, w3_t, b3 = params
    w3p = jnp.pad(w3_t, ((0, 0), (0, OUT_PAD - OUT_SIZE))).astype(jnp.bfloat16)
    b3p = jnp.pad(b3.astype(jnp.float32),
                  ((0, 0), (0, OUT_PAD - OUT_SIZE)),
                  constant_values=NEG_INF)
    return (w1_t.astype(jnp.bfloat16), b1.astype(jnp.float32),
            w2_t.astype(jnp.bfloat16), b2.astype(jnp.float32),
            w3p, b3p)


def mlp_forward(x_nchw, params):
    """x_nchw: (B, 1, 28, 28) float32 or bfloat16 -> (B, 10) probabilities
    (bfloat16)."""
    B = x_nchw.shape[0]
    # Same flattening as torch's X.view(X.size(0), -1) (row-major, free).
    x = x_nchw.reshape(B, -1)

    tb = _choose_tb(B)
    grid = (pl.cdiv(B, tb),)   # ragged last block: no batch padding of X

    w1p, b1, w2p, b2, w3p, b3p = _prepare_params(params)

    out = pl.pallas_call(
        mlp_kernel,
        out_shape=jax.ShapeDtypeStruct((B, OUT_PAD), jnp.bfloat16),
        grid_spec=pltpu.PrefetchScalarGridSpec(
            num_scalar_prefetch=0,
            grid=grid,
            in_specs=[
                # X: only per-step stream; last dim == full dim (784) is legal.
                pl.BlockSpec((tb, INPUT_SIZE), lambda i: (i, 0)),
                # Weights/biases: constant block index -> VMEM-resident.
                pl.BlockSpec((INPUT_SIZE, HIDDEN_SIZE), lambda i: (0, 0)),
                pl.BlockSpec((1, HIDDEN_SIZE), lambda i: (0, 0)),
                pl.BlockSpec((HIDDEN_SIZE, HIDDEN_SIZE), lambda i: (0, 0)),
                pl.BlockSpec((1, HIDDEN_SIZE), lambda i: (0, 0)),
                pl.BlockSpec((HIDDEN_SIZE, OUT_PAD), lambda i: (0, 0)),
                pl.BlockSpec((1, OUT_PAD), lambda i: (0, 0)),
            ],
            out_specs=pl.BlockSpec((tb, OUT_PAD), lambda i: (i, 0)),
        ),
        compiler_params=pltpu.CompilerParams(
            dimension_semantics=("parallel",),
            vmem_limit_bytes=32 << 20,
        ),
    )(x, w1p, b1, w2p, b2, w3p, b3p)

    # Drop the padded (zero-probability) class columns.
    return out[:, :OUT_SIZE]


def init_params(key):
    """Deterministic init matching nn.Linear shapes (weights stored (in, out))."""
    k1, k2, k3, k4, k5, k6 = jax.random.split(key, 6)

    def uniform(k, shape, fan_in):
        bound = 1.0 / jnp.sqrt(fan_in)
        return jax.random.uniform(k, shape, jnp.float32, -bound, bound)

    w1_t = uniform(k1, (INPUT_SIZE, HIDDEN_SIZE), INPUT_SIZE)
    b1 = uniform(k2, (1, HIDDEN_SIZE), INPUT_SIZE)
    w2_t = uniform(k3, (HIDDEN_SIZE, HIDDEN_SIZE), HIDDEN_SIZE)
    b2 = uniform(k4, (1, HIDDEN_SIZE), HIDDEN_SIZE)
    w3_t = uniform(k5, (HIDDEN_SIZE, OUT_SIZE), HIDDEN_SIZE)
    b3 = uniform(k6, (1, OUT_SIZE), HIDDEN_SIZE)
    return (w1_t, b1, w2_t, b2, w3_t, b3)


def mlp_reference(x_nchw, params):
    """Pure-JAX float32 reference for correctness check."""
    B = x_nchw.shape[0]
    x = x_nchw.reshape(B, -1).astype(jnp.float32)
    w1_t, b1, w2_t, b2, w3_t, b3 = params
    h = jnp.maximum(x @ w1_t + b1, 0.0)
    h = jnp.maximum(h @ w2_t + b2, 0.0)
    logits = h @ w3_t + b3
    return jax.nn.softmax(logits, axis=-1)


if __name__ == "__main__":
    key = jax.random.PRNGKey(0)
    kx, kp = jax.random.split(key)

    B = 8
    x = jax.random.normal(kx, (B, 1, 28, 28), jnp.float32)  # NCHW input
    params = init_params(kp)

    out = mlp_forward(x, params)
    out = jax.block_until_ready(out)

    ref = mlp_reference(x, params)
    assert out.shape == (B, OUT_SIZE)
    out_f32 = out.astype(jnp.float32)
    # bf16 matmul inputs + bf16 output -> loosened (but tight for probs) tol.
    assert jnp.allclose(out_f32, ref, atol=3e-2, rtol=0.0), (
        float(jnp.max(jnp.abs(out_f32 - ref))))
    assert jnp.allclose(out_f32.sum(axis=-1), 1.0, atol=2e-2)

    print("KERNEL_OK")
</pallas_src>

<mosaic_0001>
module attributes {stable_mosaic.version = 11 : i64} {
  func.func @mlp_kernel(%arg0: i32, %arg1: memref<16x784xf32, #tpu.memory_space<vmem>>, %arg2: memref<784x128xbf16, #tpu.memory_space<vmem>>, %arg3: memref<1x128xf32, #tpu.memory_space<vmem>>, %arg4: memref<128x128xbf16, #tpu.memory_space<vmem>>, %arg5: memref<1x128xf32, #tpu.memory_space<vmem>>, %arg6: memref<128x128xbf16, #tpu.memory_space<vmem>>, %arg7: memref<1x128xf32, #tpu.memory_space<vmem>>, %arg8: memref<16x128xbf16, #tpu.memory_space<vmem>>) attributes {dimension_semantics = [#tpu.dimension_semantics<parallel>], iteration_bounds = array<i64: 1>, scalar_prefetch = 0 : i64, scratch_operands = 0 : i64, tpu.core_type = #tpu.core_type<tc>, window_params = [{transform_indices = @transform_0, window_bounds = array<i64: 16, 784>}, {pipeline_mode = #tpu.pipeline_mode<synchronous>, transform_indices = @transform_1, window_bounds = array<i64: 784, 128>}, {pipeline_mode = #tpu.pipeline_mode<synchronous>, transform_indices = @transform_2, window_bounds = array<i64: 1, 128>}, {pipeline_mode = #tpu.pipeline_mode<synchronous>, transform_indices = @transform_3, window_bounds = array<i64: 128, 128>}, {pipeline_mode = #tpu.pipeline_mode<synchronous>, transform_indices = @transform_4, window_bounds = array<i64: 1, 128>}, {pipeline_mode = #tpu.pipeline_mode<synchronous>, transform_indices = @transform_5, window_bounds = array<i64: 128, 128>}, {pipeline_mode = #tpu.pipeline_mode<synchronous>, transform_indices = @transform_6, window_bounds = array<i64: 1, 128>}, {transform_indices = @transform_7, window_bounds = array<i64: 16, 128>}]} {
    %c0 = arith.constant 0 : index
    %c0_0 = arith.constant 0 : index
    %0 = vector.load %arg1[%c0, %c0_0] : memref<16x784xf32, #tpu.memory_space<vmem>>, vector<16x784xf32>
    %1 = arith.truncf %0 : vector<16x784xf32> to vector<16x784xbf16>
    %c0_1 = arith.constant 0 : index
    %c0_2 = arith.constant 0 : index
    %2 = vector.load %arg2[%c0_1, %c0_2] : memref<784x128xbf16, #tpu.memory_space<vmem>>, vector<784x128xbf16>
    %cst = arith.constant dense<0.000000e+00> : vector<16x128xf32>
    %3 = tpu.matmul %1, %2, %cst {dimension_numbers = #tpu.dot_dimension_numbers<[1], [0], [0], [1], [0, 0, 1, 1], [], []>} : vector<16x784xbf16>, vector<784x128xbf16>, vector<16x128xf32> -> vector<16x128xf32>
    %c0_3 = arith.constant 0 : index
    %c0_4 = arith.constant 0 : index
    %4 = vector.load %arg3[%c0_3, %c0_4] : memref<1x128xf32, #tpu.memory_space<vmem>>, vector<1x128xf32>
    %5 = vector.broadcast %4 : vector<1x128xf32> to vector<16x128xf32>
    %6 = arith.addf %3, %5 : vector<16x128xf32>
    %cst_5 = arith.constant 0.000000e+00 : f32
    %7 = vector.broadcast %cst_5 : f32 to vector<16x128xf32>
    %8 = arith.maximumf %6, %7 : vector<16x128xf32>
    %9 = arith.truncf %8 : vector<16x128xf32> to vector<16x128xbf16>
    %c0_6 = arith.constant 0 : index
    %c0_7 = arith.constant 0 : index
    %10 = vector.load %arg4[%c0_6, %c0_7] : memref<128x128xbf16, #tpu.memory_space<vmem>>, vector<128x128xbf16>
    %cst_8 = arith.constant dense<0.000000e+00> : vector<16x128xf32>
    %11 = tpu.matmul %9, %10, %cst_8 {dimension_numbers = #tpu.dot_dimension_numbers<[1], [0], [0], [1], [0, 0, 1, 1], [], []>} : vector<16x128xbf16>, vector<128x128xbf16>, vector<16x128xf32> -> vector<16x128xf32>
    %c0_9 = arith.constant 0 : index
    %c0_10 = arith.constant 0 : index
    %12 = vector.load %arg5[%c0_9, %c0_10] : memref<1x128xf32, #tpu.memory_space<vmem>>, vector<1x128xf32>
    %13 = vector.broadcast %12 : vector<1x128xf32> to vector<16x128xf32>
    %14 = arith.addf %11, %13 : vector<16x128xf32>
    %cst_11 = arith.constant 0.000000e+00 : f32
    %15 = vector.broadcast %cst_11 : f32 to vector<16x128xf32>
    %16 = arith.maximumf %14, %15 : vector<16x128xf32>
    %17 = arith.truncf %16 : vector<16x128xf32> to vector<16x128xbf16>
    %c0_12 = arith.constant 0 : index
    %c0_13 = arith.constant 0 : index
    %18 = vector.load %arg6[%c0_12, %c0_13] : memref<128x128xbf16, #tpu.memory_space<vmem>>, vector<128x128xbf16>
    %cst_14 = arith.constant dense<0.000000e+00> : vector<16x128xf32>
    %19 = tpu.matmul %17, %18, %cst_14 {dimension_numbers = #tpu.dot_dimension_numbers<[1], [0], [0], [1], [0, 0, 1, 1], [], []>} : vector<16x128xbf16>, vector<128x128xbf16>, vector<16x128xf32> -> vector<16x128xf32>
    %c0_15 = arith.constant 0 : index
    %c0_16 = arith.constant 0 : index
    %20 = vector.load %arg7[%c0_15, %c0_16] : memref<1x128xf32, #tpu.memory_space<vmem>>, vector<1x128xf32>
    %21 = vector.broadcast %20 : vector<1x128xf32> to vector<16x128xf32>
    %22 = arith.addf %19, %21 : vector<16x128xf32>
    %cst_17 = arith.constant dense<0xFF800000> : vector<16xf32>
    %23 = vector.multi_reduction <maximumf>, %22, %cst_17 [1] : vector<16x128xf32> to vector<16xf32>
    %24 = vector.shape_cast %23 : vector<16xf32> to vector<16x1xf32>
    %25 = vector.broadcast %24 : vector<16x1xf32> to vector<16x128xf32>
    %26 = arith.subf %22, %25 : vector<16x128xf32>
    %27 = math.exp %26 : vector<16x128xf32>
    %cst_18 = arith.constant dense<0.000000e+00> : vector<16xf32>
    %28 = vector.multi_reduction <add>, %27, %cst_18 [1] : vector<16x128xf32> to vector<16xf32>
    %29 = vector.shape_cast %28 : vector<16xf32> to vector<16x1xf32>
    %30 = tpu.reciprocal %29 : vector<16x1xf32> -> vector<16x1xf32>
    %31 = vector.broadcast %30 : vector<16x1xf32> to vector<16x128xf32>
    %32 = arith.mulf %27, %31 : vector<16x128xf32>
    %33 = arith.truncf %32 : vector<16x128xf32> to vector<16x128xbf16>
    %c0_19 = arith.constant 0 : index
    %c0_20 = arith.constant 0 : index
    %34 = vector.load %arg8[%c0_19, %c0_20] : memref<16x128xbf16, #tpu.memory_space<vmem>>, vector<16x128xbf16>
    tpu.vector_store %arg8[%c0_19, %c0_20], %33 {strides = array<i32>} : memref<16x128xbf16, #tpu.memory_space<vmem>>, vector<16x128xbf16>,
    return
  }
  func.func @transform_0(%arg0: i32) -> (i32, i32) {
    %c0_i32 = arith.constant 0 : i32
    %c0_i32_0 = arith.constant 0 : i32
    return %arg0, %c0_i32 : i32, i32
  }
  func.func @transform_1(%arg0: i32) -> (i32, i32) {
    %c0_i32 = arith.constant 0 : i32
    %c0_i32_0 = arith.constant 0 : i32
    %c0_i32_1 = arith.constant 0 : i32
    return %c0_i32, %c0_i32_0 : i32, i32
  }
  func.func @transform_2(%arg0: i32) -> (i32, i32) {
    %c0_i32 = arith.constant 0 : i32
    %c0_i32_0 = arith.constant 0 : i32
    %c0_i32_1 = arith.constant 0 : i32
    return %c0_i32, %c0_i32_0 : i32, i32
  }
  func.func @transform_3(%arg0: i32) -> (i32, i32) {
    %c0_i32 = arith.constant 0 : i32
    %c0_i32_0 = arith.constant 0 : i32
    %c0_i32_1 = arith.constant 0 : i32
    return %c0_i32, %c0_i32_0 : i32, i32
  }
  func.func @transform_4(%arg0: i32) -> (i32, i32) {
    %c0_i32 = arith.constant 0 : i32
    %c0_i32_0 = arith.constant 0 : i32
    %c0_i32_1 = arith.constant 0 : i32
    return %c0_i32, %c0_i32_0 : i32, i32
  }
  func.func @transform_5(%arg0: i32) -> (i32, i32) {
    %c0_i32 = arith.constant 0 : i32
    %c0_i32_0 = arith.constant 0 : i32
    %c0_i32_1 = arith.constant 0 : i32
    return %c0_i32, %c0_i32_0 : i32, i32
  }
  func.func @transform_6(%arg0: i32) -> (i32, i32) {
    %c0_i32 = arith.constant 0 : i32
    %c0_i32_0 = arith.constant 0 : i32
    %c0_i32_1 = arith.constant 0 : i32
    return %c0_i32, %c0_i32_0 : i32, i32
  }
  func.func @transform_7(%arg0: i32) -> (i32, i32) {
    %c0_i32 = arith.constant 0 : i32
    %c0_i32_0 = arith.constant 0 : i32
    return %arg0, %c0_i32 : i32, i32
  }
}

</mosaic_0001>

<bundles_post_ra>
// kernel: tpu_custom_call.1
= control target key start
LH: loop header
LB: loop body
LE: loop exit
PB: predicated region body
PF: predicated region fallthrough
CT: control target
= control target key end

     0   :  { %12 = vsyncpa [#allocation3], 0  ;;  %s1413_s0 = inlined_call_operand.hbm [shape: f32[8,784], index: 0, kind: input, shape index: {}]   ;;  %s1414_s1 = inlined_call_operand.hbm [shape: bf16[784,128], index: 1, kind: input, shape index: {}]   ;;  %s1415_s2 = inlined_call_operand.vmem [shape: f32[1,128], index: 2, kind: input, shape index: {}]   ;;  %s1416_s3 = inlined_call_operand.hbm [shape: bf16[128,128], index: 3, kind: input, shape index: {}]   ;;  %s1417_s4 = inlined_call_operand.vmem [shape: f32[1,128], index: 4, kind: input, shape index: {}]   ;;  %s1418_s5 = inlined_call_operand.hbm [shape: bf16[128,128], index: 5, kind: input, shape index: {}]   ;;  %s1419_s6 = inlined_call_operand.vmem [shape: f32[1,128], index: 6, kind: input, shape index: {}]   ;;  %s1420_s7 = inlined_call_operand.hbm [shape: bf16[8,128], index: 7, kind: output, shape index: {}]  }
   0x1   :  { %13 = vsyncpa [#allocation6], 0 }
   0x2   :  { %14 = vsyncpa [#allocation9], 0 }
   0x3   :  { %15 = vsyncpa [#allocation4], 0  ;;  %s33_s26 = sshll.u32 %s1414_s1, 4  ;;  %s34_s26 = int_to_ptr.hbm [resolvable:$true] %s33_s26 }
   0x4   :  { %19 = vsyncadd [#allocation3], 896  ;;  %s1328_s27 = smov [#allocation5]   ;;  %s20_s8 = sshll.u32 %s1413_s0, 4  ;;  %s21_s8 = int_to_ptr.hbm [resolvable:$true] %s20_s8 }
   0x5   :  { %s35_s28 = sshll.u32 %s1328_s27, 4  ;;  %s1329_s9 = smov 64   ;;  %s36_s28 = int_to_ptr.vmem [resolvable:$true] %s35_s28 }
   0x6   :  { %s1330_s10 = smov 4   ;;  %s1331_s11 = smov [#allocation2]  }
   0x7   :  { %41 = dma.hbm_to_vmem [thread:$0]  %s34_s26, 6272, %s36_s28, [#allocation6], %s1329_s9, %s1329_s9, %s1330_s10  }
   0x8   :  { %s22_s12 = sshll.u32 %s1331_s11, 4  ;;  %s1332_s1 = smov 896   ;;  %s23_s12 = int_to_ptr.vmem [resolvable:$true] %s22_s12 }
   0x9   :  { %s1333_s13 = smov 56   ;;  %s48_s16 = sshll.u32 %s1416_s3, 4  ;;  %s49_s16 = int_to_ptr.hbm [resolvable:$true] %s48_s16 }
   0xa   :  { %28 = dma.hbm_to_vmem [thread:$0]  %s21_s8, 896, %s23_s12, [#allocation3], %s1332_s1, %s1332_s1, %s1333_s13  }
   0xb   :  { %s1334_s17 = smov [#allocation7]   ;;  %s63_s20 = sshll.u32 %s1418_s5, 4  ;;  %s64_s20 = int_to_ptr.hbm [resolvable:$true] %s63_s20 }
   0xc   :  { %s50_s0 = sshll.u32 %s1334_s17, 4  ;;  %s1335_s21 = smov [#allocation8]   ;;  %s51_s0 = int_to_ptr.vmem [resolvable:$true] %s50_s0 }
   0xd   :  { %56 = dma.hbm_to_vmem [thread:$0]  %s49_s16, 1024, %s51_s0, [#allocation6], %s1329_s9, %s1329_s9, %s1330_s10  }
   0xe   :  { %s65_s22 = sshll.u32 %s1335_s21, 4  ;;  %s66_s22 = int_to_ptr.vmem [resolvable:$true] %s65_s22 }
   0xf   :  { %71 = dma.hbm_to_vmem [thread:$0]  %s64_s20, 1024, %s66_s22, [#allocation9], %s1329_s9, %s1329_s9, %s1330_s10  }
  0x10   :  { %1320 = dma.done.wait [#allocation3], 1792  }
  0x11   :  { %1321 = vsyncadd [#allocation3], 4294965504 }
  0x12   :  { %1322 = dma.done.wait [#allocation6], 7296  }
  0x13   :  { %1323 = vsyncadd [#allocation6], 4294960000 }
  0x14   :  { %1324 = dma.done.wait [#allocation9], 1024  }
  0x15   :  { %1325 = vsyncadd [#allocation9], 4294966272  ;;  %v1117_v0 = vld [vmem:[#allocation5 + $0x38] sm:$0xff]  ;;  %v1116_v4 = vld [vmem:[#allocation5 + $0x30] sm:$0xff]  ;;  %vm508_vm0 = vcmask 130048  }
  0x16   :  { %v1125_v1 = vld [vmem:[#allocation5 + $0x78] sm:$0xff]  ;;  %512 = vmatpush.bf16.msra.mxu0 %v1117_v0  ;;  %v1124_v5 = vld [vmem:[#allocation5 + $0x70] sm:$0xff]  ;;  %v1115_v8 = vld [vmem:[#allocation5 + $0x28] sm:$0xff] }
  0x17   :  { %v1133_v2 = vld [vmem:[#allocation5 + $0xb8] sm:$0xff]  ;;  %526 = vmatpush.bf16.msra.mxu1 %v1125_v1  ;;  %v1132_v6 = vld [vmem:[#allocation5 + $0xb0] sm:$0xff]  ;;  %v1123_v9 = vld [vmem:[#allocation5 + $0x68] sm:$0xff] }
  0x18   :  { %v1141_v3 = vld [vmem:[#allocation5 + $0xf8] sm:$0xff]  ;;  %540 = vmatpush.bf16.msra.mxu2 %v1133_v2  ;;  %v1140_v7 = vld [vmem:[#allocation5 + $0xf0] sm:$0xff]  ;;  %v1131_v10 = vld [vmem:[#allocation5 + $0xa8] sm:$0xff] }
  0x19   :  { %554 = vmatpush.bf16.msra.mxu3 %v1141_v3  ;;  %v1139_v11 = vld [vmem:[#allocation5 + $0xe8] sm:$0xff]  ;;  %v1114_v12 = vld [vmem:[#allocation5 + $0x20] sm:$0xff]  ;;  %v1113_v16 = vld [vmem:[#allocation5 + $0x18] sm:$0xff] }
  0x1a   :  { %513 = vmatpush.bf16.msra.mxu0 %v1116_v4  ;;  %v1122_v13 = vld [vmem:[#allocation5 + $0x60] sm:$0xff]  ;;  %v1121_v17 = vld [vmem:[#allocation5 + $0x58] sm:$0xff]  ;;  %v1112_v20 = vld [vmem:[#allocation5 + $0x10] sm:$0xff] }
  0x1b   :  { %527 = vmatpush.bf16.msra.mxu1 %v1124_v5  ;;  %v1130_v14 = vld [vmem:[#allocation5 + $0xa0] sm:$0xff]  ;;  %v1129_v18 = vld [vmem:[#allocation5 + $0x98] sm:$0xff]  ;;  %v1120_v21 = vld [vmem:[#allocation5 + $0x50] sm:$0xff] }
  0x1c   :  { %541 = vmatpush.bf16.msra.mxu2 %v1132_v6  ;;  %v1138_v15 = vld [vmem:[#allocation5 + $0xe0] sm:$0xff]  ;;  %v1137_v19 = vld [vmem:[#allocation5 + $0xd8] sm:$0xff]  ;;  %v1128_v22 = vld [vmem:[#allocation5 + $0x90] sm:$0xff] }
  0x1d   :  { %555 = vmatpush.bf16.msra.mxu3 %v1140_v7  ;;  %v1136_v23 = vld [vmem:[#allocation5 + $0xd0] sm:$0xff]  ;;  %v1111_v24 = vld [vmem:[#allocation5 + $0x8] sm:$0xff]  ;;  %v1110_v28 = vld [vmem:[#allocation5] sm:$0xff] }
  0x1e   :  { %514 = vmatpush.bf16.msra.mxu0 %v1115_v8  ;;  %v1119_v25 = vld [vmem:[#allocation5 + $0x48] sm:$0xff]  ;;  %v1118_v29 = vld [vmem:[#allocation5 + $0x40] sm:$0xff]  ;;  %v91_v30 = vld [vmem:[#allocation2] sm:$0xff] }
  0x1f   :  { %528 = vmatpush.bf16.msra.mxu1 %v1123_v9  ;;  %v1127_v26 = vld [vmem:[#allocation5 + $0x88] sm:$0xff]  ;;  %v92_v32 = vld [vmem:[#allocation2 + $0x8] sm:$0xff]  ;;  %v99_v33 = vld [vmem:[#allocation2 + $0x40] sm:$0xff] }
  0x20   :  { %542 = vmatpush.bf16.msra.mxu2 %v1131_v10  ;;  %v1135_v27 = vld [vmem:[#allocation5 + $0xc8] sm:$0xff]  ;;  %v1149_v34 = vld [vmem:[#allocation5 + $0x138] sm:$0xff]  ;;  %v1126_v36 = vld [vmem:[#allocation5 + $0x80] sm:$0xff]  ;;  %v106_v43 = vpack.c.bf16 %v99_v33, %v92_v32 }
  0x21   :  { %556 = vmatpush.bf16.msra.mxu3 %v1139_v11  ;;  %v98_v31 = vld [vmem:[#allocation2 + $0x38] sm:$0xff]  ;;  %v1157_v35 = vld [vmem:[#allocation5 + $0x178] sm:$0xff]  ;;  %v1134_v37 = vld [vmem:[#allocation5 + $0xc0] sm:$0xff] }
  0x22   :  { %515 = vmatpush.bf16.msra.mxu0 %v1114_v12  ;;  %v93_v38 = vld [vmem:[#allocation2 + $0x10] sm:$0xff]  ;;  %v100_v39 = vld [vmem:[#allocation2 + $0x48] sm:$0xff]  ;;  %v105_v40 = vpack.c.bf16 %v98_v31, %v91_v30  ;;  %v94_v41 = vld [vmem:[#allocation2 + $0x18] sm:$0xff] }
  0x23   :  { %529 = vmatpush.bf16.msra.mxu1 %v1122_v13  ;;  %v101_v42 = vld [vmem:[#allocation2 + $0x50] sm:$0xff]  ;;  %v1148_v45 = vld [vmem:[#allocation5 + $0x130] sm:$0xff]  ;;  %v107_v47 = vpack.c.bf16 %v100_v39, %v93_v38  ;;  %v1147_v49 = vld [vmem:[#allocation5 + $0x128] sm:$0xff] }
  0x24   :  { %543 = vmatpush.bf16.msra.mxu2 %v1130_v14  ;;  %v1158_v44 = vld [vmem:[#allocation5 + $0x180] sm:$0xff]  ;;  %v1156_v46 = vld [vmem:[#allocation5 + $0x170] sm:$0xff]  ;;  %v108_v48 = vpack.c.bf16 %v101_v42, %v94_v41  ;;  %v1155_v50 = vld [vmem:[#allocation5 + $0x168] sm:$0xff] }
  0x25   :  { %557 = vmatpush.bf16.msra.mxu3 %v1138_v15  ;;  %v1146_v51 = vld [vmem:[#allocation5 + $0x120] sm:$0xff]  ;;  %v1145_v53 = vld [vmem:[#allocation5 + $0x118] sm:$0xff]  ;;  %v1144_v57 = vld [vmem:[#allocation5 + $0x110] sm:$0xff] }
  0x26   :  { %516 = vmatpush.bf16.msra.mxu0 %v1113_v16  ;;  %v1154_v52 = vld [vmem:[#allocation5 + $0x160] sm:$0xff]  ;;  %v1153_v54 = vld [vmem:[#allocation5 + $0x158] sm:$0xff]  ;;  %v1152_v58 = vld [vmem:[#allocation5 + $0x150] sm:$0xff] }
  0x27   :  { %530 = vmatpush.bf16.msra.mxu1 %v1121_v17  ;;  %v97_v55 = vld [vmem:[#allocation2 + $0x30] sm:$0xff]  ;;  %v104_v56 = vld [vmem:[#allocation2 + $0x68] sm:$0xff]  ;;  %v1143_v60 = vld [vmem:[#allocation5 + $0x108] sm:$0xff] }
  0x28   :  { %544 = vmatpush.bf16.msra.mxu2 %v1129_v18  ;;  %v111_v59 = vpack.c.bf16 %v104_v56, %v97_v55  ;;  %v1151_v61 = vld [vmem:[#allocation5 + $0x148] sm:$0xff]  ;;  %v1142_v62 = vld [vmem:[#allocation5 + $0x100] sm:$0xff]  ;;  %v95_v0 = vld [vmem:[#allocation2 + $0x20] sm:$0xff] }
  0x29   :  { %558 = vmatpush.bf16.msra.mxu3 %v1137_v19  ;;  %v1150_v63 = vld [vmem:[#allocation5 + $0x140] sm:$0xff]  ;;  %v102_v1 = vld [vmem:[#allocation2 + $0x58] sm:$0xff]  ;;  %v96_v2 = vld [vmem:[#allocation2 + $0x28] sm:$0xff] }
  0x2a   :  { %517 = vmatpush.bf16.msra.mxu0 %v1112_v20  ;;  %v103_v3 = vld [vmem:[#allocation2 + $0x60] sm:$0xff]  ;;  %v109_v4 = vpack.c.bf16 %v102_v1, %v95_v0  ;;  %v1166_v6 = vld [vmem:[#allocation7 + $0x38] sm:$0xff]  ;;  %v1165_v7 = vld [vmem:[#allocation7 + $0x30] sm:$0xff] }
  0x2b   :  { %531 = vmatpush.bf16.msra.mxu1 %v1120_v21  ;;  %v110_v5 = vpack.c.bf16 %v103_v3, %v96_v2  ;;  %v1164_v8 = vld [vmem:[#allocation7 + $0x28] sm:$0xff]  ;;  %v1163_v9 = vld [vmem:[#allocation7 + $0x20] sm:$0xff]  ;;  %v1162_v10 = vld [vmem:[#allocation7 + $0x18] sm:$0xff] }
  0x2c   :  { %545 = vmatpush.bf16.msra.mxu2 %v1128_v22  ;;  %v1161_v11 = vld [vmem:[#allocation7 + $0x10] sm:$0xff]  ;;  %v1160_v12 = vld [vmem:[#allocation7 + $0x8] sm:$0xff]  ;;  %v1159_v16 = vld [vmem:[#allocation7] sm:$0xff] }
  0x2d   :  { %559 = vmatpush.bf16.msra.mxu3 %v1136_v23  ;;  %v1189_v17 = vld [vmem:[%s1415_s2] ss:$0 sm:$0xff]  ;;  %v1174_v18 = vld [vmem:[#allocation8 + $0x38] sm:$0xff]  ;;  %v1173_v20 = vld [vmem:[#allocation8 + $0x30] sm:$0xff] }
  0x2e   :  { %518 = vmatpush.bf16.msra.mxu0 %v1111_v24  ;;  %v1190_v55 = vld [vmem:[%s1417_s4] ss:$0 sm:$0xff] }
  0x2f   :  { %532 = vmatpush.bf16.msra.mxu1 %v1119_v25  ;;  %v1172_v25 = vld [vmem:[#allocation8 + $0x28] sm:$0xff] }
  0x30   :  { %546 = vmatpush.bf16.msra.mxu2 %v1127_v26 }
  0x31   :  { %560 = vmatpush.bf16.msra.mxu3 %v1135_v27 }
  0x32   :  { %519 = vmatpush.bf16.msra.mxu0 %v1110_v28 }
  0x33   :  { %533 = vmatpush.bf16.msra.mxu1 %v1118_v29  ;;  %v1171_v29 = vld [vmem:[#allocation8 + $0x20] sm:$0xff] }
  0x34   :  { %547 = vmatpush.bf16.msra.mxu2 %v1126_v36 }
  0x35   :  { %561 = vmatpush.bf16.msra.mxu3 %v1134_v37  ;;  %520 = vmatmul.bf16.vlgmr.msra.gmra.mxu0 %v105_v40 }
  0x36   :  { %568 = vmatpush.bf16.msrb.mxu0 %v1149_v34  ;;  %534 = vmatmul.bf16.vlgmr.msra.gmra.mxu1 %v106_v43 }
  0x37   :  { %582 = vmatpush.bf16.msrb.mxu1 %v1157_v35  ;;  %548 = vmatmul.bf16.vlgmr.msra.gmra.mxu2 %v107_v47 }
  0x38   :  { %603 = vmatpush.bf16.msrb.mxu2 %v1158_v44  ;;  %562 = vmatmul.bf16.vlgmr.msra.gmra.mxu3 %v108_v48 }
  0x39   :  { %681 = vmatpush.bf16.msrb.mxu3 %v1166_v6 }
  0x3a   :  { %569 = vmatpush.bf16.msrb.mxu0 %v1148_v45 }
  0x3b   :  { %583 = vmatpush.bf16.msrb.mxu1 %v1156_v46 }
  0x3c   :  { %766 = vmatpush.bf16.msra.mxu2 %v1174_v18 }
  0x3d   :  { %682 = vmatpush.bf16.msrb.mxu3 %v1165_v7 }
  0x3e   :  { %570 = vmatpush.bf16.msrb.mxu0 %v1147_v49 }
  0x3f   :  { %584 = vmatpush.bf16.msrb.mxu1 %v1155_v50  ;;  %v1170_v50 = vld [vmem:[#allocation8 + $0x18] sm:$0xff] }
  0x40   :  { %767 = vmatpush.bf16.msra.mxu2 %v1173_v20 }
  0x41   :  { %683 = vmatpush.bf16.msrb.mxu3 %v1164_v8 }
  0x42   :  { %571 = vmatpush.bf16.msrb.mxu0 %v1146_v51  ;;  %v1169_v51 = vld [vmem:[#allocation8 + $0x10] sm:$0xff] }
  0x43   :  { %585 = vmatpush.bf16.msrb.mxu1 %v1154_v52  ;;  %v1168_v52 = vld [vmem:[#allocation8 + $0x8] sm:$0xff] }
  0x44   :  { %768 = vmatpush.bf16.msra.mxu2 %v1172_v25 }
  0x45   :  { %684 = vmatpush.bf16.msrb.mxu3 %v1163_v9 }
  0x46   :  { %572 = vmatpush.bf16.msrb.mxu0 %v1145_v53  ;;  %v1167_v53 = vld [vmem:[#allocation8] sm:$0xff] }
  0x47   :  { %586 = vmatpush.bf16.msrb.mxu1 %v1153_v54  ;;  %1045 = vmatmul.msk.bf16.vlgmr.msrb.gmra.mxu2 %vm508_vm0, %v111_v59 }
  0x48   :  { %769 = vmatpush.bf16.msra.mxu2 %v1171_v29 }
  0x49   :  { %685 = vmatpush.bf16.msrb.mxu3 %v1162_v10 }
  0x4a   :  { %573 = vmatpush.bf16.msrb.mxu0 %v1144_v57 }
  0x4b   :  { %587 = vmatpush.bf16.msrb.mxu1 %v1152_v58 }
  0x4c   :  { %770 = vmatpush.bf16.msra.mxu2 %v1170_v50 }
  0x4d   :  { %686 = vmatpush.bf16.msrb.mxu3 %v1161_v11 }
  0x4e   :  { %574 = vmatpush.bf16.msrb.mxu0 %v1143_v60 }
  0x4f   :  { %588 = vmatpush.bf16.msrb.mxu1 %v1151_v61 }
  0x50   :  { %771 = vmatpush.bf16.msra.mxu2 %v1169_v51 }
  0x51   :  { %687 = vmatpush.bf16.msrb.mxu3 %v1160_v12 }
  0x52   :  { %575 = vmatpush.bf16.msrb.mxu0 %v1142_v62  ;;  %v1191_v62 = vld [vmem:[%s1419_s6] ss:$0 sm:$0xff] }
  0x53   :  { %589 = vmatpush.bf16.msrb.mxu1 %v1150_v63 }
  0x54   :  { %772 = vmatpush.bf16.msra.mxu2 %v1168_v52 }
  0x55   :  { %576 = vmatmul.bf16.vlgmr.msrb.gmra.mxu0 %v109_v4  ;;  %688 = vmatpush.bf16.msrb.mxu3 %v1159_v16 }
  0x56   :  { %590 = vmatmul.bf16.vlgmr.msrb.gmra.mxu1 %v110_v5 }
  0x58   :  { %773 = vmatpush.bf16.msra.mxu2 %v1167_v53 }
  0xb2   :  { %v521_v13 = vpop.f32.mrf.mxu0 }
  0xb3   :  { %v535_v14 = vpop.f32.mrf.mxu1  ;;  %v522_v19 = vadd.f32 %v1189_v17, %v521_v13 }
  0xb5   :  { %v536_v24 = vadd.f32 %v535_v14, %v522_v19 }
  0xba   :  { %v549_v15 = vpop.f32.mrf.mxu2  ;;  %v523_v21 = vpop.f32.mrf.mxu0 }
  0xbb   :  { %v537_v22 = vpop.f32.mrf.mxu1  ;;  %v563_v26 = vpop.f32.mrf.mxu3  ;;  %v524_v27 = vadd.f32 %v1189_v17, %v523_v21  ;;  %v550_v28 = vadd.f32 %v549_v15, %v536_v24 }
  0xbd   :  { %v538_v30 = vadd.f32 %v537_v22, %v524_v27  ;;  %v564_v33 = vadd.f32 %v563_v26, %v550_v28 }
  0xc2   :  { %v551_v23 = vpop.f32.mrf.mxu2 }
  0xc3   :  { %v552_v35 = vadd.f32 %v551_v23, %v538_v30  ;;  %v565_v37 = vpop.f32.mrf.mxu3 }
  0xc5   :  { %v566_v38 = vadd.f32 %v565_v37, %v552_v35 }
  0xca   :  { %v605_v34 = vpop.f32.mrf.mxu2 }
  0xd2   :  { %v577_v31 = vpop.f32.mrf.mxu0  ;;  %v607_v45 = vpop.f32.mrf.mxu2 }
  0xd3   :  { %v591_v32 = vpop.f32.mrf.mxu1  ;;  %v578_v36 = vadd.f32 %v577_v31, %v564_v33 }
  0xd5   :  { %v592_v39 = vadd.f32 %v591_v32, %v578_v36 }
  0xd7   :  { %v606_v43 = vadd.f32 %v605_v34, %v592_v39 }
  0xd9   :  { %v610_v47 = vmax.f32 %v606_v43, 0.0 }
  0xda   :  { %v579_v40 = vpop.f32.mrf.mxu0 }
  0xdb   :  { %v580_v41 = vadd.f32 %v579_v40, %v566_v38  ;;  %v593_v42 = vpop.f32.mrf.mxu1 }
  0xdd   :  { %v594_v44 = vadd.f32 %v593_v42, %v580_v41 }
  0xdf   :  { %v608_v46 = vadd.f32 %v607_v45, %v594_v44 }
  0xe1   :  { %v611_v48 = vmax.f32 %v608_v46, 0.0 }
  0xe3   :  { %v612_v49 = vpack.c.bf16 %v611_v48, %v610_v47 }
  0xe5   :  { %689 = vmatmul.bf16.vlgmr.msrb.gmra.mxu3 %v612_v49 }
 0x168   :  { %v690_v54 = vpop.f32.mrf.mxu3 }
 0x169   :  { %v691_v56 = vadd.f32 %v1190_v55, %v690_v54 }
 0x16b   :  { %v695_v59 = vmax.f32 %v691_v56, 0.0 }
 0x170   :  { %v692_v57 = vpop.f32.mrf.mxu3 }
 0x171   :  { %v693_v58 = vadd.f32 %v1190_v55, %v692_v57 }
 0x173   :  { %v696_v60 = vmax.f32 %v693_v58, 0.0 }
 0x175   :  { %v697_v61 = vpack.c.bf16 %v696_v60, %v695_v59 }
 0x177   :  { %774 = vmatmul.bf16.vlgmr.msra.gmra.mxu2 %v697_v61 }
 0x1fa   :  { %v775_v63 = vpop.f32.mrf.mxu2 }
 0x1fb   :  { %v776_v0 = vadd.f32 %v1191_v62, %v775_v63 }
 0x1fd   :  { %780 = vmax.xlane.f32.xlu0 %v776_v0 }
 0x202   :  { %v777_v1 = vpop.f32.mrf.mxu2 }
 0x203   :  { %v778_v2 = vadd.f32 %v1191_v62, %v777_v1 }
 0x205   :  { %782 = vmax.xlane.f32.xlu0 %v778_v2 }
 0x270   :  { %v781_v3 = vpop.xlane.xlu0 %780 }
 0x271   :  { %v784_v4 = vsub.f32 %v776_v0, %v781_v3 }
 0x273   :  { %v786_v5 = vmul.f32 1.442695, %v784_v4 }
 0x275   :  { %1192 = vpow2.f32 %v786_v5 }
 0x278   :  { %v783_v6 = vpop.xlane.xlu0 %782 }
 0x279   :  { %v785_v7 = vsub.f32 %v778_v2, %v783_v6 }
 0x27b   :  { %v1193_v8 = vpop.eup %1192  ;;  %v788_v9 = vmul.f32 1.442695, %v785_v7 }
 0x27c   :  { %790 = vadd.xlane.f32.xlu1 %v1193_v8 }
 0x27d   :  { %1194 = vpow2.f32 %v788_v9 }
 0x283   :  { %v1195_v10 = vpop.eup %1194 }
 0x284   :  { %792 = vadd.xlane.f32.xlu1 %v1195_v10 }
 0x2ef   :  { %v791_v11 = vpop.xlane.xlu1 %790 }
 0x2f0   :  { %1196 = vrcp.f32 %v791_v11  ;;  %v805_v20 = vand.u32 2147483648, %v791_v11  ;;  %vm799_vm2 = vweird.f32 %v791_v11  ;;  %v803_v21 = vand.u32 2147483647, %v791_v11 }
 0x2f2   :  { %v806_v27 = vor.u32 1.1754944e-38, %v805_v20  ;;  %vm804_vm5 = vcmp.eq.f32.partialorder %v803_v21, 8.507059e+37 }
 0x2f6   :  { %v1197_v12 = vpop.eup %1196 }
 0x2f7   :  { %v795_v13 = vmul.f32 %v1197_v12, %v791_v11  ;;  %v793_v14 = vpop.xlane.xlu1 %792  ;;  %vm800_vm1 = vweird.f32 %v1197_v12 }
 0x2f8   :  { %1198 = vrcp.f32 %v793_v14  ;;  %vm801_vm3 = vmor %vm799_vm2, %vm800_vm1  ;;  %v819_v23 = vand.u32 2147483648, %v793_v14  ;;  %v817_v26 = vand.u32 2147483647, %v793_v14  ;;  %vm813_vm6 = vweird.f32 %v793_v14 }
 0x2f9   :  { %v796_v15 = vsub.f32 1.0, %v795_v13 }
 0x2fa   :  { %v820_v30 = vor.u32 1.1754944e-38, %v819_v23  ;;  %vm818_vm8 = vcmp.eq.f32.partialorder %v817_v26, 8.507059e+37 }
 0x2fb   :  { %v797_v16 = vmul.f32 %v1197_v12, %v796_v15 }
 0x2fd   :  { %v798_v18 = vadd.f32 %v1197_v12, %v797_v16 }
 0x2fe   :  { %v1199_v17 = vpop.eup %1198 }
 0x2ff   :  { %v809_v19 = vmul.f32 %v1199_v17, %v793_v14  ;;  %v802_v24 = vsel %vm801_vm3, %v1197_v12, %v798_v18  ;;  %vm814_vm4 = vweird.f32 %v1199_v17 }
 0x300   :  { %v807_v29 = vsel %vm804_vm5, %v806_v27, %v802_v24  ;;  %vm815_vm7 = vmor %vm813_vm6, %vm814_vm4 }
 0x301   :  { %v810_v22 = vsub.f32 1.0, %v809_v19  ;;  %v822_v33 = vmul.f32 %v1193_v8, %v807_v29 }
 0x303   :  { %v811_v25 = vmul.f32 %v1199_v17, %v810_v22 }
 0x305   :  { %v812_v28 = vadd.f32 %v1199_v17, %v811_v25 }
 0x307   :  { %v816_v31 = vsel %vm815_vm7, %v1199_v17, %v812_v28 }
 0x308   :  { %v821_v32 = vsel %vm818_vm8, %v820_v30, %v816_v31 }
 0x309   :  { %v823_v34 = vmul.f32 %v1195_v10, %v821_v32 }
 0x30b   :  { %v1178_v35 = vpack.c.bf16 %v823_v34, %v822_v33 }
 0x30d   :  { %1179 = vst [vmem:[#allocation10] sm:$0xff] %v1178_v35  }
 0x30e   :  { %831 = vsyncadd [#allocation4], 64  ;;  %s834_s26 = sshll.u32 %s1420_s7, 4  ;;  %s1336_s27 = smov [#allocation10]   ;;  %s835_s26 = int_to_ptr.hbm [resolvable:$true] %s834_s26 }
 0x30f   :  { %s832_s28 = sshll.u32 %s1336_s27, 4  ;;  %s833_s28 = int_to_ptr.vmem [resolvable:$true] %s832_s28 }
 0x310   :  { %840 = dma.vmem_to_hbm [thread:$0]  %s833_s28, 64, %s835_s26, [#allocation4], %s1329_s9, %s1329_s9, %s1330_s10  }
 0x311   :  { %1326 = dma.done.wait [#allocation4], 128  }
 0x312   :  { %1327 = vsyncadd [#allocation4], 4294967168 }
 0x313   :  { %845 = vsyncpa [#allocation3], 1 }
 0x314   :  { %846 = vsyncpa [#allocation6], 1 }
 0x315   :  { %847 = vsyncpa [#allocation9], 1 }
 0x316   :  { %848 = vsyncpa [#allocation4], 1 }

</bundles_post_ra>
